<compile_context>
chip_gen: v5e
topology: v5e:2x2
jax: 0.10.0
libtpu: 0.0.40
codegen_flags: <defaults>
</compile_context>

<pallas_src>
import math

import jax
import jax.numpy as jnp
from jax import lax
from jax.experimental import pallas as pl
from jax.experimental.pallas import tpu as pltpu

D_MODEL = 64
N_HEADS = 8
HEAD_DIM = D_MODEL // N_HEADS
DROPOUT = 0.1  # identity at inference


def attention_kernel(q_ref, k_ref, v_ref,
                     wq_ref, bq_ref, wk_ref, bk_ref, wv_ref, bv_ref,
                     o_ref):
    """Fused multi-head attention for one batch element.

    q_ref/k_ref/v_ref : (1, S, D) VMEM tiles
    w*_ref            : (D, D)   pre-transposed projection weights (x @ W)
    b*_ref            : (1, D)   biases
    o_ref             : (1, S, D)
    """
    q_in = q_ref[0].astype(jnp.float32)              # (S, D)
    k_in = k_ref[0].astype(jnp.float32)
    v_in = v_ref[0].astype(jnp.float32)

    # Full-width projections on the MXU (f32 accumulate).
    Q = jnp.dot(q_in, wq_ref[...], preferred_element_type=jnp.float32) + bq_ref[...]
    K = jnp.dot(k_in, wk_ref[...], preferred_element_type=jnp.float32) + bk_ref[...]
    V = jnp.dot(v_in, wv_ref[...], preferred_element_type=jnp.float32) + bv_ref[...]

    scale = 1.0 / math.sqrt(HEAD_DIM)

    head_outs = []
    for h in range(N_HEADS):                         # static unroll over heads
        lo = h * HEAD_DIM
        qh = Q[:, lo:lo + HEAD_DIM]                  # (S, hd) static lane slice
        kh = K[:, lo:lo + HEAD_DIM]
        vh = V[:, lo:lo + HEAD_DIM]

        # score = qh @ kh^T  (contract over head_dim)
        s = lax.dot_general(qh, kh,
                            dimension_numbers=(((1,), (1,)), ((), ())),
                            preferred_element_type=jnp.float32) * scale  # (S, S)

        # numerically stable softmax over keys
        s = s - jnp.max(s, axis=-1, keepdims=True)
        p = jnp.exp(s)
        p = p / jnp.sum(p, axis=-1, keepdims=True)

        # TODO(synk): nn.Dropout(p) is identity here (inference); training-mode
        # dropout would use pltpu.prng_seed + pltpu.prng_random_bits.
        head_outs.append(jnp.dot(p, vh, preferred_element_type=jnp.float32))

    # Single lane-dense (full d_model width) store.
    o_ref[0] = jnp.concatenate(head_outs, axis=-1).astype(o_ref.dtype)


def multi_head_attention(query, key, value, wq, bq, wk, bk, wv, bv):
    """query/key/value: [B, S, D].  Weights pre-transposed to (in, out)."""
    B, S, D = query.shape
    assert D == D_MODEL and D % N_HEADS == 0

    bq2 = bq.reshape(1, D)
    bk2 = bk.reshape(1, D)
    bv2 = bv.reshape(1, D)

    qkv_spec = pl.BlockSpec((1, S, D), lambda b: (b, 0, 0))
    w_spec = pl.BlockSpec((D, D), lambda b: (0, 0))      # resident across grid
    b_spec = pl.BlockSpec((1, D), lambda b: (0, 0))      # resident across grid

    out = pl.pallas_call(
        attention_kernel,
        out_shape=jax.ShapeDtypeStruct((B, S, D), query.dtype),
        grid_spec=pltpu.PrefetchScalarGridSpec(
            num_scalar_prefetch=0,
            grid=(B,),
            in_specs=[
                qkv_spec, qkv_spec, qkv_spec,          # query, key, value
                w_spec, b_spec,                        # w_q, b_q
                w_spec, b_spec,                        # w_k, b_k
                w_spec, b_spec,                        # w_v, b_v
            ],
            out_specs=pl.BlockSpec((1, S, D), lambda b: (b, 0, 0)),
        ),
        compiler_params=pltpu.CompilerParams(
            dimension_semantics=("parallel",)),
    )(query, key, value, wq, bq2, wk, bk2, wv, bv2)
    return out


def init_params(key):
    """Mirror nn.Linear defaults: U(-1/sqrt(fan_in), 1/sqrt(fan_in))."""
    ks = jax.random.split(key, 6)
    bound = 1.0 / math.sqrt(D_MODEL)
    # Stored pre-transposed (in_features, out_features) so kernels do x @ W.
    wq = jax.random.uniform(ks[0], (D_MODEL, D_MODEL), jnp.float32, -bound, bound)
    bq = jax.random.uniform(ks[1], (D_MODEL,), jnp.float32, -bound, bound)
    wk = jax.random.uniform(ks[2], (D_MODEL, D_MODEL), jnp.float32, -bound, bound)
    bk = jax.random.uniform(ks[3], (D_MODEL,), jnp.float32, -bound, bound)
    wv = jax.random.uniform(ks[4], (D_MODEL, D_MODEL), jnp.float32, -bound, bound)
    bv = jax.random.uniform(ks[5], (D_MODEL,), jnp.float32, -bound, bound)
    return wq, bq, wk, bk, wv, bv


def reference_attention(query, key, value, wq, bq, wk, bk, wv, bv):
    B, S, D = query.shape
    Q = query @ wq + bq
    K = key @ wk + bk
    V = value @ wv + bv
    Q = Q.reshape(B, S, N_HEADS, HEAD_DIM).transpose(0, 2, 1, 3)
    K = K.reshape(B, S, N_HEADS, HEAD_DIM).transpose(0, 2, 1, 3)
    V = V.reshape(B, S, N_HEADS, HEAD_DIM).transpose(0, 2, 1, 3)
    s = jnp.einsum('bhqd,bhkd->bhqk', Q, K) / math.sqrt(HEAD_DIM)
    p = jax.nn.softmax(s, axis=-1)
    o = jnp.einsum('bhqk,bhkd->bhqd', p, V)
    return o.transpose(0, 2, 1, 3).reshape(B, S, D)


if __name__ == "__main__":
    key = jax.random.PRNGKey(0)
    kq, kk, kv, kp = jax.random.split(key, 4)

    B, S = 4, 8
    query = jax.random.normal(kq, (B, S, D_MODEL), jnp.float32)
    key_in = jax.random.normal(kk, (B, S, D_MODEL), jnp.float32)
    value = jax.random.normal(kv, (B, S, D_MODEL), jnp.float32)
    params = init_params(kp)

    out = multi_head_attention(query, key_in, value, *params)
    out = jax.block_until_ready(out)

    ref = reference_attention(query, key_in, value, *params)
    assert out.shape == (B, S, D_MODEL)
    assert jnp.allclose(out, ref, atol=1e-4, rtol=1e-4), "mismatch vs reference"

    print("KERNEL_OK")
</pallas_src>

<mosaic_0001>
module attributes {stable_mosaic.version = 11 : i64} {
  func.func @attention_kernel(%arg0: i32, %arg1: memref<1x8x64xf32, #tpu.memory_space<vmem>>, %arg2: memref<1x8x64xf32, #tpu.memory_space<vmem>>, %arg3: memref<1x8x64xf32, #tpu.memory_space<vmem>>, %arg4: memref<64x64xf32, #tpu.memory_space<vmem>>, %arg5: memref<1x64xf32, #tpu.memory_space<vmem>>, %arg6: memref<64x64xf32, #tpu.memory_space<vmem>>, %arg7: memref<1x64xf32, #tpu.memory_space<vmem>>, %arg8: memref<64x64xf32, #tpu.memory_space<vmem>>, %arg9: memref<1x64xf32, #tpu.memory_space<vmem>>, %arg10: memref<1x8x64xf32, #tpu.memory_space<vmem>>) attributes {dimension_semantics = [#tpu.dimension_semantics<parallel>], iteration_bounds = array<i64: 4>, scalar_prefetch = 0 : i64, scratch_operands = 0 : i64, tpu.core_type = #tpu.core_type<tc>, window_params = [{transform_indices = @transform_0, window_bounds = array<i64: 1, 8, 64>}, {transform_indices = @transform_1, window_bounds = array<i64: 1, 8, 64>}, {transform_indices = @transform_2, window_bounds = array<i64: 1, 8, 64>}, {pipeline_mode = #tpu.pipeline_mode<synchronous>, transform_indices = @transform_3, window_bounds = array<i64: 64, 64>}, {pipeline_mode = #tpu.pipeline_mode<synchronous>, transform_indices = @transform_4, window_bounds = array<i64: 1, 64>}, {pipeline_mode = #tpu.pipeline_mode<synchronous>, transform_indices = @transform_5, window_bounds = array<i64: 64, 64>}, {pipeline_mode = #tpu.pipeline_mode<synchronous>, transform_indices = @transform_6, window_bounds = array<i64: 1, 64>}, {pipeline_mode = #tpu.pipeline_mode<synchronous>, transform_indices = @transform_7, window_bounds = array<i64: 64, 64>}, {pipeline_mode = #tpu.pipeline_mode<synchronous>, transform_indices = @transform_8, window_bounds = array<i64: 1, 64>}, {transform_indices = @transform_9, window_bounds = array<i64: 1, 8, 64>}]} {
    %c0 = arith.constant 0 : index
    %c0_0 = arith.constant 0 : index
    %c0_1 = arith.constant 0 : index
    %0 = vector.load %arg1[%c0, %c0_0, %c0_1] : memref<1x8x64xf32, #tpu.memory_space<vmem>>, vector<1x8x64xf32>
    %1 = vector.shape_cast %0 : vector<1x8x64xf32> to vector<8x64xf32>
    %c0_2 = arith.constant 0 : index
    %c0_3 = arith.constant 0 : index
    %c0_4 = arith.constant 0 : index
    %2 = vector.load %arg2[%c0_2, %c0_3, %c0_4] : memref<1x8x64xf32, #tpu.memory_space<vmem>>, vector<1x8x64xf32>
    %3 = vector.shape_cast %2 : vector<1x8x64xf32> to vector<8x64xf32>
    %c0_5 = arith.constant 0 : index
    %c0_6 = arith.constant 0 : index
    %c0_7 = arith.constant 0 : index
    %4 = vector.load %arg3[%c0_5, %c0_6, %c0_7] : memref<1x8x64xf32, #tpu.memory_space<vmem>>, vector<1x8x64xf32>
    %5 = vector.shape_cast %4 : vector<1x8x64xf32> to vector<8x64xf32>
    %c0_8 = arith.constant 0 : index
    %c0_9 = arith.constant 0 : index
    %6 = vector.load %arg4[%c0_8, %c0_9] : memref<64x64xf32, #tpu.memory_space<vmem>>, vector<64x64xf32>
    %cst = arith.constant dense<0.000000e+00> : vector<8x64xf32>
    %7 = tpu.matmul %1, %6, %cst {dimension_numbers = #tpu.dot_dimension_numbers<[1], [0], [0], [1], [0, 0, 1, 1], [], []>} : vector<8x64xf32>, vector<64x64xf32>, vector<8x64xf32> -> vector<8x64xf32>
    %c0_10 = arith.constant 0 : index
    %c0_11 = arith.constant 0 : index
    %8 = vector.load %arg5[%c0_10, %c0_11] : memref<1x64xf32, #tpu.memory_space<vmem>>, vector<1x64xf32>
    %9 = vector.broadcast %8 : vector<1x64xf32> to vector<8x64xf32>
    %10 = arith.addf %7, %9 : vector<8x64xf32>
    %c0_12 = arith.constant 0 : index
    %c0_13 = arith.constant 0 : index
    %11 = vector.load %arg6[%c0_12, %c0_13] : memref<64x64xf32, #tpu.memory_space<vmem>>, vector<64x64xf32>
    %cst_14 = arith.constant dense<0.000000e+00> : vector<8x64xf32>
    %12 = tpu.matmul %3, %11, %cst_14 {dimension_numbers = #tpu.dot_dimension_numbers<[1], [0], [0], [1], [0, 0, 1, 1], [], []>} : vector<8x64xf32>, vector<64x64xf32>, vector<8x64xf32> -> vector<8x64xf32>
    %c0_15 = arith.constant 0 : index
    %c0_16 = arith.constant 0 : index
    %13 = vector.load %arg7[%c0_15, %c0_16] : memref<1x64xf32, #tpu.memory_space<vmem>>, vector<1x64xf32>
    %14 = vector.broadcast %13 : vector<1x64xf32> to vector<8x64xf32>
    %15 = arith.addf %12, %14 : vector<8x64xf32>
    %c0_17 = arith.constant 0 : index
    %c0_18 = arith.constant 0 : index
    %16 = vector.load %arg8[%c0_17, %c0_18] : memref<64x64xf32, #tpu.memory_space<vmem>>, vector<64x64xf32>
    %cst_19 = arith.constant dense<0.000000e+00> : vector<8x64xf32>
    %17 = tpu.matmul %5, %16, %cst_19 {dimension_numbers = #tpu.dot_dimension_numbers<[1], [0], [0], [1], [0, 0, 1, 1], [], []>} : vector<8x64xf32>, vector<64x64xf32>, vector<8x64xf32> -> vector<8x64xf32>
    %c0_20 = arith.constant 0 : index
    %c0_21 = arith.constant 0 : index
    %18 = vector.load %arg9[%c0_20, %c0_21] : memref<1x64xf32, #tpu.memory_space<vmem>>, vector<1x64xf32>
    %19 = vector.broadcast %18 : vector<1x64xf32> to vector<8x64xf32>
    %20 = arith.addf %17, %19 : vector<8x64xf32>
    %21 = vector.extract_strided_slice %10 {offsets = [0, 0], sizes = [8, 8], strides = [1, 1]} : vector<8x64xf32> to vector<8x8xf32>
    %22 = vector.extract_strided_slice %15 {offsets = [0, 0], sizes = [8, 8], strides = [1, 1]} : vector<8x64xf32> to vector<8x8xf32>
    %23 = vector.extract_strided_slice %20 {offsets = [0, 0], sizes = [8, 8], strides = [1, 1]} : vector<8x64xf32> to vector<8x8xf32>
    %cst_22 = arith.constant dense<0.000000e+00> : vector<8x8xf32>
    %24 = tpu.matmul %21, %22, %cst_22 {dimension_numbers = #tpu.dot_dimension_numbers<[1], [1], [0], [0], [0, 0, 1, 0], [], []>} : vector<8x8xf32>, vector<8x8xf32>, vector<8x8xf32> -> vector<8x8xf32>
    %cst_23 = arith.constant 0.353553385 : f32
    %25 = vector.broadcast %cst_23 : f32 to vector<8x8xf32>
    %26 = arith.mulf %24, %25 : vector<8x8xf32>
    %cst_24 = arith.constant dense<0xFF800000> : vector<8xf32>
    %27 = vector.multi_reduction <maximumf>, %26, %cst_24 [1] : vector<8x8xf32> to vector<8xf32>
    %28 = vector.shape_cast %27 : vector<8xf32> to vector<8x1xf32>
    %29 = vector.broadcast %28 : vector<8x1xf32> to vector<8x8xf32>
    %30 = arith.subf %26, %29 : vector<8x8xf32>
    %31 = math.exp %30 : vector<8x8xf32>
    %cst_25 = arith.constant dense<0.000000e+00> : vector<8xf32>
    %32 = vector.multi_reduction <add>, %31, %cst_25 [1] : vector<8x8xf32> to vector<8xf32>
    %33 = vector.shape_cast %32 : vector<8xf32> to vector<8x1xf32>
    %34 = vector.broadcast %33 : vector<8x1xf32> to vector<8x8xf32>
    %35 = arith.divf %31, %34 : vector<8x8xf32>
    %cst_26 = arith.constant dense<0.000000e+00> : vector<8x8xf32>
    %36 = tpu.matmul %35, %23, %cst_26 {dimension_numbers = #tpu.dot_dimension_numbers<[1], [0], [0], [1], [0, 0, 1, 1], [], []>} : vector<8x8xf32>, vector<8x8xf32>, vector<8x8xf32> -> vector<8x8xf32>
    %37 = vector.extract_strided_slice %10 {offsets = [0, 8], sizes = [8, 8], strides = [1, 1]} : vector<8x64xf32> to vector<8x8xf32>
    %38 = vector.extract_strided_slice %15 {offsets = [0, 8], sizes = [8, 8], strides = [1, 1]} : vector<8x64xf32> to vector<8x8xf32>
    %39 = vector.extract_strided_slice %20 {offsets = [0, 8], sizes = [8, 8], strides = [1, 1]} : vector<8x64xf32> to vector<8x8xf32>
    %cst_27 = arith.constant dense<0.000000e+00> : vector<8x8xf32>
    %40 = tpu.matmul %37, %38, %cst_27 {dimension_numbers = #tpu.dot_dimension_numbers<[1], [1], [0], [0], [0, 0, 1, 0], [], []>} : vector<8x8xf32>, vector<8x8xf32>, vector<8x8xf32> -> vector<8x8xf32>
    %cst_28 = arith.constant 0.353553385 : f32
    %41 = vector.broadcast %cst_28 : f32 to vector<8x8xf32>
    %42 = arith.mulf %40, %41 : vector<8x8xf32>
    %cst_29 = arith.constant dense<0xFF800000> : vector<8xf32>
    %43 = vector.multi_reduction <maximumf>, %42, %cst_29 [1] : vector<8x8xf32> to vector<8xf32>
    %44 = vector.shape_cast %43 : vector<8xf32> to vector<8x1xf32>
    %45 = vector.broadcast %44 : vector<8x1xf32> to vector<8x8xf32>
    %46 = arith.subf %42, %45 : vector<8x8xf32>
    %47 = math.exp %46 : vector<8x8xf32>
    %cst_30 = arith.constant dense<0.000000e+00> : vector<8xf32>
    %48 = vector.multi_reduction <add>, %47, %cst_30 [1] : vector<8x8xf32> to vector<8xf32>
    %49 = vector.shape_cast %48 : vector<8xf32> to vector<8x1xf32>
    %50 = vector.broadcast %49 : vector<8x1xf32> to vector<8x8xf32>
    %51 = arith.divf %47, %50 : vector<8x8xf32>
    %cst_31 = arith.constant dense<0.000000e+00> : vector<8x8xf32>
    %52 = tpu.matmul %51, %39, %cst_31 {dimension_numbers = #tpu.dot_dimension_numbers<[1], [0], [0], [1], [0, 0, 1, 1], [], []>} : vector<8x8xf32>, vector<8x8xf32>, vector<8x8xf32> -> vector<8x8xf32>
    %53 = vector.extract_strided_slice %10 {offsets = [0, 16], sizes = [8, 8], strides = [1, 1]} : vector<8x64xf32> to vector<8x8xf32>
    %54 = vector.extract_strided_slice %15 {offsets = [0, 16], sizes = [8, 8], strides = [1, 1]} : vector<8x64xf32> to vector<8x8xf32>
    %55 = vector.extract_strided_slice %20 {offsets = [0, 16], sizes = [8, 8], strides = [1, 1]} : vector<8x64xf32> to vector<8x8xf32>
    %cst_32 = arith.constant dense<0.000000e+00> : vector<8x8xf32>
    %56 = tpu.matmul %53, %54, %cst_32 {dimension_numbers = #tpu.dot_dimension_numbers<[1], [1], [0], [0], [0, 0, 1, 0], [], []>} : vector<8x8xf32>, vector<8x8xf32>, vector<8x8xf32> -> vector<8x8xf32>
    %cst_33 = arith.constant 0.353553385 : f32
    %57 = vector.broadcast %cst_33 : f32 to vector<8x8xf32>
    %58 = arith.mulf %56, %57 : vector<8x8xf32>
    %cst_34 = arith.constant dense<0xFF800000> : vector<8xf32>
    %59 = vector.multi_reduction <maximumf>, %58, %cst_34 [1] : vector<8x8xf32> to vector<8xf32>
    %60 = vector.shape_cast %59 : vector<8xf32> to vector<8x1xf32>
    %61 = vector.broadcast %60 : vector<8x1xf32> to vector<8x8xf32>
    %62 = arith.subf %58, %61 : vector<8x8xf32>
    %63 = math.exp %62 : vector<8x8xf32>
    %cst_35 = arith.constant dense<0.000000e+00> : vector<8xf32>
    %64 = vector.multi_reduction <add>, %63, %cst_35 [1] : vector<8x8xf32> to vector<8xf32>
    %65 = vector.shape_cast %64 : vector<8xf32> to vector<8x1xf32>
    %66 = vector.broadcast %65 : vector<8x1xf32> to vector<8x8xf32>
    %67 = arith.divf %63, %66 : vector<8x8xf32>
    %cst_36 = arith.constant dense<0.000000e+00> : vector<8x8xf32>
    %68 = tpu.matmul %67, %55, %cst_36 {dimension_numbers = #tpu.dot_dimension_numbers<[1], [0], [0], [1], [0, 0, 1, 1], [], []>} : vector<8x8xf32>, vector<8x8xf32>, vector<8x8xf32> -> vector<8x8xf32>
    %69 = vector.extract_strided_slice %10 {offsets = [0, 24], sizes = [8, 8], strides = [1, 1]} : vector<8x64xf32> to vector<8x8xf32>
    %70 = vector.extract_strided_slice %15 {offsets = [0, 24], sizes = [8, 8], strides = [1, 1]} : vector<8x64xf32> to vector<8x8xf32>
    %71 = vector.extract_strided_slice %20 {offsets = [0, 24], sizes = [8, 8], strides = [1, 1]} : vector<8x64xf32> to vector<8x8xf32>
    %cst_37 = arith.constant dense<0.000000e+00> : vector<8x8xf32>
    %72 = tpu.matmul %69, %70, %cst_37 {dimension_numbers = #tpu.dot_dimension_numbers<[1], [1], [0], [0], [0, 0, 1, 0], [], []>} : vector<8x8xf32>, vector<8x8xf32>, vector<8x8xf32> -> vector<8x8xf32>
    %cst_38 = arith.constant 0.353553385 : f32
    %73 = vector.broadcast %cst_38 : f32 to vector<8x8xf32>
    %74 = arith.mulf %72, %73 : vector<8x8xf32>
    %cst_39 = arith.constant dense<0xFF800000> : vector<8xf32>
    %75 = vector.multi_reduction <maximumf>, %74, %cst_39 [1] : vector<8x8xf32> to vector<8xf32>
    %76 = vector.shape_cast %75 : vector<8xf32> to vector<8x1xf32>
    %77 = vector.broadcast %76 : vector<8x1xf32> to vector<8x8xf32>
    %78 = arith.subf %74, %77 : vector<8x8xf32>
    %79 = math.exp %78 : vector<8x8xf32>
    %cst_40 = arith.constant dense<0.000000e+00> : vector<8xf32>
    %80 = vector.multi_reduction <add>, %79, %cst_40 [1] : vector<8x8xf32> to vector<8xf32>
    %81 = vector.shape_cast %80 : vector<8xf32> to vector<8x1xf32>
    %82 = vector.broadcast %81 : vector<8x1xf32> to vector<8x8xf32>
    %83 = arith.divf %79, %82 : vector<8x8xf32>
    %cst_41 = arith.constant dense<0.000000e+00> : vector<8x8xf32>
    %84 = tpu.matmul %83, %71, %cst_41 {dimension_numbers = #tpu.dot_dimension_numbers<[1], [0], [0], [1], [0, 0, 1, 1], [], []>} : vector<8x8xf32>, vector<8x8xf32>, vector<8x8xf32> -> vector<8x8xf32>
    %85 = vector.extract_strided_slice %10 {offsets = [0, 32], sizes = [8, 8], strides = [1, 1]} : vector<8x64xf32> to vector<8x8xf32>
    %86 = vector.extract_strided_slice %15 {offsets = [0, 32], sizes = [8, 8], strides = [1, 1]} : vector<8x64xf32> to vector<8x8xf32>
    %87 = vector.extract_strided_slice %20 {offsets = [0, 32], sizes = [8, 8], strides = [1, 1]} : vector<8x64xf32> to vector<8x8xf32>
    %cst_42 = arith.constant dense<0.000000e+00> : vector<8x8xf32>
    %88 = tpu.matmul %85, %86, %cst_42 {dimension_numbers = #tpu.dot_dimension_numbers<[1], [1], [0], [0], [0, 0, 1, 0], [], []>} : vector<8x8xf32>, vector<8x8xf32>, vector<8x8xf32> -> vector<8x8xf32>
    %cst_43 = arith.constant 0.353553385 : f32
    %89 = vector.broadcast %cst_43 : f32 to vector<8x8xf32>
    %90 = arith.mulf %88, %89 : vector<8x8xf32>
    %cst_44 = arith.constant dense<0xFF800000> : vector<8xf32>
    %91 = vector.multi_reduction <maximumf>, %90, %cst_44 [1] : vector<8x8xf32> to vector<8xf32>
    %92 = vector.shape_cast %91 : vector<8xf32> to vector<8x1xf32>
    %93 = vector.broadcast %92 : vector<8x1xf32> to vector<8x8xf32>
    %94 = arith.subf %90, %93 : vector<8x8xf32>
    %95 = math.exp %94 : vector<8x8xf32>
    %cst_45 = arith.constant dense<0.000000e+00> : vector<8xf32>
    %96 = vector.multi_reduction <add>, %95, %cst_45 [1] : vector<8x8xf32> to vector<8xf32>
    %97 = vector.shape_cast %96 : vector<8xf32> to vector<8x1xf32>
    %98 = vector.broadcast %97 : vector<8x1xf32> to vector<8x8xf32>
    %99 = arith.divf %95, %98 : vector<8x8xf32>
    %cst_46 = arith.constant dense<0.000000e+00> : vector<8x8xf32>
    %100 = tpu.matmul %99, %87, %cst_46 {dimension_numbers = #tpu.dot_dimension_numbers<[1], [0], [0], [1], [0, 0, 1, 1], [], []>} : vector<8x8xf32>, vector<8x8xf32>, vector<8x8xf32> -> vector<8x8xf32>
    %101 = vector.extract_strided_slice %10 {offsets = [0, 40], sizes = [8, 8], strides = [1, 1]} : vector<8x64xf32> to vector<8x8xf32>
    %102 = vector.extract_strided_slice %15 {offsets = [0, 40], sizes = [8, 8], strides = [1, 1]} : vector<8x64xf32> to vector<8x8xf32>
    %103 = vector.extract_strided_slice %20 {offsets = [0, 40], sizes = [8, 8], strides = [1, 1]} : vector<8x64xf32> to vector<8x8xf32>
    %cst_47 = arith.constant dense<0.000000e+00> : vector<8x8xf32>
    %104 = tpu.matmul %101, %102, %cst_47 {dimension_numbers = #tpu.dot_dimension_numbers<[1], [1], [0], [0], [0, 0, 1, 0], [], []>} : vector<8x8xf32>, vector<8x8xf32>, vector<8x8xf32> -> vector<8x8xf32>
    %cst_48 = arith.constant 0.353553385 : f32
    %105 = vector.broadcast %cst_48 : f32 to vector<8x8xf32>
    %106 = arith.mulf %104, %105 : vector<8x8xf32>
    %cst_49 = arith.constant dense<0xFF800000> : vector<8xf32>
    %107 = vector.multi_reduction <maximumf>, %106, %cst_49 [1] : vector<8x8xf32> to vector<8xf32>
    %108 = vector.shape_cast %107 : vector<8xf32> to vector<8x1xf32>
    %109 = vector.broadcast %108 : vector<8x1xf32> to vector<8x8xf32>
    %110 = arith.subf %106, %109 : vector<8x8xf32>
    %111 = math.exp %110 : vector<8x8xf32>
    %cst_50 = arith.constant dense<0.000000e+00> : vector<8xf32>
    %112 = vector.multi_reduction <add>, %111, %cst_50 [1] : vector<8x8xf32> to vector<8xf32>
    %113 = vector.shape_cast %112 : vector<8xf32> to vector<8x1xf32>
    %114 = vector.broadcast %113 : vector<8x1xf32> to vector<8x8xf32>
    %115 = arith.divf %111, %114 : vector<8x8xf32>
    %cst_51 = arith.constant dense<0.000000e+00> : vector<8x8xf32>
    %116 = tpu.matmul %115, %103, %cst_51 {dimension_numbers = #tpu.dot_dimension_numbers<[1], [0], [0], [1], [0, 0, 1, 1], [], []>} : vector<8x8xf32>, vector<8x8xf32>, vector<8x8xf32> -> vector<8x8xf32>
    %117 = vector.extract_strided_slice %10 {offsets = [0, 48], sizes = [8, 8], strides = [1, 1]} : vector<8x64xf32> to vector<8x8xf32>
    %118 = vector.extract_strided_slice %15 {offsets = [0, 48], sizes = [8, 8], strides = [1, 1]} : vector<8x64xf32> to vector<8x8xf32>
    %119 = vector.extract_strided_slice %20 {offsets = [0, 48], sizes = [8, 8], strides = [1, 1]} : vector<8x64xf32> to vector<8x8xf32>
    %cst_52 = arith.constant dense<0.000000e+00> : vector<8x8xf32>
    %120 = tpu.matmul %117, %118, %cst_52 {dimension_numbers = #tpu.dot_dimension_numbers<[1], [1], [0], [0], [0, 0, 1, 0], [], []>} : vector<8x8xf32>, vector<8x8xf32>, vector<8x8xf32> -> vector<8x8xf32>
    %cst_53 = arith.constant 0.353553385 : f32
    %121 = vector.broadcast %cst_53 : f32 to vector<8x8xf32>
    %122 = arith.mulf %120, %121 : vector<8x8xf32>
    %cst_54 = arith.constant dense<0xFF800000> : vector<8xf32>
    %123 = vector.multi_reduction <maximumf>, %122, %cst_54 [1] : vector<8x8xf32> to vector<8xf32>
    %124 = vector.shape_cast %123 : vector<8xf32> to vector<8x1xf32>
    %125 = vector.broadcast %124 : vector<8x1xf32> to vector<8x8xf32>
    %126 = arith.subf %122, %125 : vector<8x8xf32>
    %127 = math.exp %126 : vector<8x8xf32>
    %cst_55 = arith.constant dense<0.000000e+00> : vector<8xf32>
    %128 = vector.multi_reduction <add>, %127, %cst_55 [1] : vector<8x8xf32> to vector<8xf32>
    %129 = vector.shape_cast %128 : vector<8xf32> to vector<8x1xf32>
    %130 = vector.broadcast %129 : vector<8x1xf32> to vector<8x8xf32>
    %131 = arith.divf %127, %130 : vector<8x8xf32>
    %cst_56 = arith.constant dense<0.000000e+00> : vector<8x8xf32>
    %132 = tpu.matmul %131, %119, %cst_56 {dimension_numbers = #tpu.dot_dimension_numbers<[1], [0], [0], [1], [0, 0, 1, 1], [], []>} : vector<8x8xf32>, vector<8x8xf32>, vector<8x8xf32> -> vector<8x8xf32>
    %133 = vector.extract_strided_slice %10 {offsets = [0, 56], sizes = [8, 8], strides = [1, 1]} : vector<8x64xf32> to vector<8x8xf32>
    %134 = vector.extract_strided_slice %15 {offsets = [0, 56], sizes = [8, 8], strides = [1, 1]} : vector<8x64xf32> to vector<8x8xf32>
    %135 = vector.extract_strided_slice %20 {offsets = [0, 56], sizes = [8, 8], strides = [1, 1]} : vector<8x64xf32> to vector<8x8xf32>
    %cst_57 = arith.constant dense<0.000000e+00> : vector<8x8xf32>
    %136 = tpu.matmul %133, %134, %cst_57 {dimension_numbers = #tpu.dot_dimension_numbers<[1], [1], [0], [0], [0, 0, 1, 0], [], []>} : vector<8x8xf32>, vector<8x8xf32>, vector<8x8xf32> -> vector<8x8xf32>
    %cst_58 = arith.constant 0.353553385 : f32
    %137 = vector.broadcast %cst_58 : f32 to vector<8x8xf32>
    %138 = arith.mulf %136, %137 : vector<8x8xf32>
    %cst_59 = arith.constant dense<0xFF800000> : vector<8xf32>
    %139 = vector.multi_reduction <maximumf>, %138, %cst_59 [1] : vector<8x8xf32> to vector<8xf32>
    %140 = vector.shape_cast %139 : vector<8xf32> to vector<8x1xf32>
    %141 = vector.broadcast %140 : vector<8x1xf32> to vector<8x8xf32>
    %142 = arith.subf %138, %141 : vector<8x8xf32>
    %143 = math.exp %142 : vector<8x8xf32>
    %cst_60 = arith.constant dense<0.000000e+00> : vector<8xf32>
    %144 = vector.multi_reduction <add>, %143, %cst_60 [1] : vector<8x8xf32> to vector<8xf32>
    %145 = vector.shape_cast %144 : vector<8xf32> to vector<8x1xf32>
    %146 = vector.broadcast %145 : vector<8x1xf32> to vector<8x8xf32>
    %147 = arith.divf %143, %146 : vector<8x8xf32>
    %cst_61 = arith.constant dense<0.000000e+00> : vector<8x8xf32>
    %148 = tpu.matmul %147, %135, %cst_61 {dimension_numbers = #tpu.dot_dimension_numbers<[1], [0], [0], [1], [0, 0, 1, 1], [], []>} : vector<8x8xf32>, vector<8x8xf32>, vector<8x8xf32> -> vector<8x8xf32>
    %149 = tpu.concatenate %36, %52, %68, %84, %100, %116, %132, %148 in 1 : vector<8x8xf32>, vector<8x8xf32>, vector<8x8xf32>, vector<8x8xf32>, vector<8x8xf32>, vector<8x8xf32>, vector<8x8xf32>, vector<8x8xf32> -> vector<8x64xf32>
    %c0_62 = arith.constant 0 : index
    %c0_63 = arith.constant 0 : index
    %c0_64 = arith.constant 0 : index
    %150 = vector.load %arg10[%c0_62, %c0_63, %c0_64] : memref<1x8x64xf32, #tpu.memory_space<vmem>>, vector<1x8x64xf32>
    %151 = vector.shape_cast %150 : vector<1x8x64xf32> to vector<8x64xf32>
    %152 = vector.shape_cast %149 : vector<8x64xf32> to vector<1x8x64xf32>
    tpu.vector_store %arg10[%c0_62, %c0_63, %c0_64], %152 {strides = array<i32>} : memref<1x8x64xf32, #tpu.memory_space<vmem>>, vector<1x8x64xf32>,
    return
  }
  func.func @transform_0(%arg0: i32) -> (i32, i32, i32) {
    %c0_i32 = arith.constant 0 : i32
    %c0_i32_0 = arith.constant 0 : i32
    %c0_i32_1 = arith.constant 0 : i32
    return %arg0, %c0_i32, %c0_i32_0 : i32, i32, i32
  }
  func.func @transform_1(%arg0: i32) -> (i32, i32, i32) {
    %c0_i32 = arith.constant 0 : i32
    %c0_i32_0 = arith.constant 0 : i32
    %c0_i32_1 = arith.constant 0 : i32
    return %arg0, %c0_i32, %c0_i32_0 : i32, i32, i32
  }
  func.func @transform_2(%arg0: i32) -> (i32, i32, i32) {
    %c0_i32 = arith.constant 0 : i32
    %c0_i32_0 = arith.constant 0 : i32
    %c0_i32_1 = arith.constant 0 : i32
    return %arg0, %c0_i32, %c0_i32_0 : i32, i32, i32
  }
  func.func @transform_3(%arg0: i32) -> (i32, i32) {
    %c0_i32 = arith.constant 0 : i32
    %c0_i32_0 = arith.constant 0 : i32
    %c0_i32_1 = arith.constant 0 : i32
    return %c0_i32, %c0_i32_0 : i32, i32
  }
  func.func @transform_4(%arg0: i32) -> (i32, i32) {
    %c0_i32 = arith.constant 0 : i32
    %c0_i32_0 = arith.constant 0 : i32
    %c0_i32_1 = arith.constant 0 : i32
    return %c0_i32, %c0_i32_0 : i32, i32
  }
  func.func @transform_5(%arg0: i32) -> (i32, i32) {
    %c0_i32 = arith.constant 0 : i32
    %c0_i32_0 = arith.constant 0 : i32
    %c0_i32_1 = arith.constant 0 : i32
    return %c0_i32, %c0_i32_0 : i32, i32
  }
  func.func @transform_6(%arg0: i32) -> (i32, i32) {
    %c0_i32 = arith.constant 0 : i32
    %c0_i32_0 = arith.constant 0 : i32
    %c0_i32_1 = arith.constant 0 : i32
    return %c0_i32, %c0_i32_0 : i32, i32
  }
  func.func @transform_7(%arg0: i32) -> (i32, i32) {
    %c0_i32 = arith.constant 0 : i32
    %c0_i32_0 = arith.constant 0 : i32
    %c0_i32_1 = arith.constant 0 : i32
    return %c0_i32, %c0_i32_0 : i32, i32
  }
  func.func @transform_8(%arg0: i32) -> (i32, i32) {
    %c0_i32 = arith.constant 0 : i32
    %c0_i32_0 = arith.constant 0 : i32
    %c0_i32_1 = arith.constant 0 : i32
    return %c0_i32, %c0_i32_0 : i32, i32
  }
  func.func @transform_9(%arg0: i32) -> (i32, i32, i32) {
    %c0_i32 = arith.constant 0 : i32
    %c0_i32_0 = arith.constant 0 : i32
    %c0_i32_1 = arith.constant 0 : i32
    return %arg0, %c0_i32, %c0_i32_0 : i32, i32, i32
  }
}

</mosaic_0001>

<bundles_post_ra>
// kernel: tpu_custom_call.1
= control target key start
LH: loop header
LB: loop body
LE: loop exit
PB: predicated region body
PF: predicated region fallthrough
CT: control target
= control target key end

     0   :  { %s2302_s0 = inlined_call_operand.hbm [shape: f32[4,8,64], index: 0, kind: input, shape index: {}]   ;;  %s2303_s1 = inlined_call_operand.hbm [shape: f32[4,8,64], index: 1, kind: input, shape index: {}]   ;;  %s2304_s2 = inlined_call_operand.hbm [shape: f32[4,8,64], index: 2, kind: input, shape index: {}]   ;;  %s2305_s3 = inlined_call_operand.hbm [shape: f32[64,64], index: 3, kind: input, shape index: {}]   ;;  %s2306_s4 = inlined_call_operand.vmem [shape: f32[1,64], index: 4, kind: input, shape index: {}]   ;;  %s2307_s5 = inlined_call_operand.hbm [shape: f32[64,64], index: 5, kind: input, shape index: {}]   ;;  %s2308_s6 = inlined_call_operand.vmem [shape: f32[1,64], index: 6, kind: input, shape index: {}]   ;;  %s2309_s7 = inlined_call_operand.hbm [shape: f32[64,64], index: 7, kind: input, shape index: {}]   ;;  %s2310_s8 = inlined_call_operand.vmem [shape: f32[1,64], index: 8, kind: input, shape index: {}]   ;;  %s2311_s9 = inlined_call_operand.hbm [shape: f32[4,8,64], index: 9, kind: output, shape index: {}]  }
   0x1   :  { %2326 = sst [smem:[#allocation25_spill]] %s2303_s1 }
   0x2   :  { %2327 = sst [smem:[#allocation26_spill]] %s2305_s3 }
   0x3   :  { %2328 = sst [smem:[#allocation27_spill]] %s2311_s9 }
   0x4   :  { %14 = vsyncpa [#allocation3], 0 }
   0x5   :  { %16 = vsyncpa [#allocation3 + $0x1], 0 }
   0x6   :  { %17 = vsyncpa [#allocation6], 0 }
   0x7   :  { %19 = vsyncpa [#allocation6 + $0x1], 0 }
   0x8   :  { %20 = vsyncpa [#allocation9], 0 }
   0x9   :  { %21 = vsyncpa [#allocation12], 0 }
   0xa   :  { %22 = vsyncpa [#allocation4], 0 }
   0xb   :  { %24 = vsyncpa [#allocation4 + $0x1], 0  ;;  %s1931_s30 = smov 0   ;;  %s1933_s10 = smov 0  }
   0xc   :  { %s1935_s11 = smov 0   ;;  %s1937_s12 = smov 0  }
   0xd LB: > { %2329 = sst [smem:[#allocation19_spill]] %s1848_s30  ;;  %s1955_s16 = sadd.s32 4294967295, %s1860_s12   ;;  %s1860_s12 = sphi %s1937_s12, %s2355_s12   ;;  %s1856_s11 = sphi %s1935_s11, %s2359_s11   ;;  %s1852_s10 = sphi %s1933_s10, %s2358_s10   ;;  %s1848_s30 = sphi %s1931_s30, %s2357_s30  }
   0xe   : > { %2330 = sst [smem:[#allocation20_spill]] %s1860_s12  ;;  %p1414_p0 = scmp.ge.s32.totalorder %s1860_s12, 1 }
   0xf   : > { %s2331_s3 = sld [smem:[#allocation26_spill]]  ;;  %p2325_p1 = scmp.eq.s32.totalorder %s1955_s16, 0 }
  0x10   : > { %p265_p2 = scmp.lt.s32.totalorder %s1860_s12, 5  ;;  %s1862_s18 = smov [#allocation8]  }
  0x11   : > { %s278_s19 = sshll.u32 %s1862_s18, 4  ;;  %s2312_s21 = smov 128   ;;  %s279_s19 = int_to_ptr.vmem [resolvable:$true] %s278_s19 }
  0x12   : > { %p1960_p3 = pnand %p1414_p0, %p265_p2  ;;  %s2314_s22 = smov 8  }
  0x13   : > { %s1413_s23 = sadd.s32 4294967294, %s1860_s12   ;;  %s1979_s24 = sadd.s32 1, %s1860_s12  }
  0x14   : > { %p1484_p4 = pneg %p1960_p3  ;;  %2334 = sst [smem:[#allocation21_spill]] %s1979_s24 }
  0x15   : > { %s276_s15 = sshll.u32 %s2331_s3, 4  ;;  %s37_s25 = sadd.s32 1, %s1856_s11  ;;  %s277_s15 = int_to_ptr.hbm [resolvable:$true] %s276_s15 }
  0x16   : > { %p1968_p5 = pnand %p1484_p4, %p2325_p1  ;;  %s34_s26 = ssub.s32 %s1860_s12, %s1979_s24 }
  0x17   : > { %p44_p6 = scmp.ne.s32.totalorder %s1856_s11, %s1852_s10  ;;  %p35_p7 = scmp.eq.s32.totalorder %s34_s26, 0 }
  0x18   : > { %1487 = dma.hbm_to_vmem [thread:$0]  (!%p1968_p5), %s277_s15, 1024, %s279_s19, [#allocation9], %s2312_s21, %s2312_s21, %s2314_s22  }
  0x19   : > { %p45_p8 = scmp.eq.s32.totalorder %s1860_s12, 0  ;;  %p50_p9 = scmp.ne.s32.totalorder %s1852_s10, %s1848_s30 }
  0x1a   : > { %p252_p10 = scmp.eq.s32.totalorder %s1955_s16, 3  ;;  %p258_p0 = scmp.eq.s32.totalorder %s1413_s23, 3 }
  0x1b   : > { %s1991_s27 = scalar_select %p35_p7, %s1856_s11, %s37_s25  }
  0x1c   : > { %p46_p11 = por %p45_p8, %p44_p6  ;;  %p1995_p12 = por %p2325_p1, %p50_p9 }
  0x1d   : > { %2335 = sst [smem:[#allocation22_spill]] %s1991_s27  ;;  %p1999_p13 = por %p252_p10, %p44_p6 }
  0x1e   : > { %p1511_p2 = scmp.lt.s32.totalorder %s1860_s12, 4  ;;  %s2316_s13 = sand.u32 1, %s1856_s11  }
  0x1f   : > { %s2337_s29 = scalar_select %p1999_p13, 1, 0 }
  0x20   : > { %p2005_p4 = por %p258_p0, %p50_p9  ;;  %s2011_s15 = sshll.u32 %s2316_s13, 3 }
  0x21   : > { %2338 = sst [smem:[#allocation23_spill]] %s2337_s29  ;;  %s2014_s18 = sshll.u32 %s1860_s12, 3 }
  0x22   : > { %s2339_s14 = scalar_select %p2005_p4, 1, 0 }
  0x23   : > { %p2016_p7 = pnand %p1511_p2, %p46_p11  ;;  %s348_s23 = sand.u32 1, %s1860_s12  }
  0x24   : > { %2340 = sst [smem:[#allocation24_spill]] %s2339_s14  ;;  %s352_s22 = scalar_lea.vmem [#allocation5], %s2011_s15 }
  0x25   : > { %s2342_s1 = sld [smem:[#allocation25_spill]]  ;;  %s360_s3 = sshll.u32 %s352_s22, 4  ;;  %s361_s3 = int_to_ptr.vmem [resolvable:$true] %s360_s3 }
  0x26   : > { %s293_s14 = sshll.u32 %s2307_s5, 4  ;;  %s2029_s30 = scalar_lea.sflag [#allocation6], %s348_s23  ;;  %s294_s14 = int_to_ptr.hbm [resolvable:$true] %s293_s14 }
  0x27   : > { %p1636_p8 = pneg %p2016_p7 }
  0x2b   : > { %s356_s21 = scalar_lea.hbm %s2342_s1, %s2014_s18  ;;  %s1639_s25 = scalar_lea.hbm %s2342_s1, 32 }
  0x2c   : > { %s358_s27 = sshll.u32 %s356_s21, 4  ;;  %s359_s27 = int_to_ptr.hbm [resolvable:$true] %s358_s27 }
  0x2d   : > { %s1632_s29 = sshra.s32 %s359_s27, 4  ;;  %s1633_s29 = int_to_ptr.hbm [resolvable:$true] %s1632_s29 }
  0x2e   : > { %s1634_s9 = scalar_lea.hbm %s1633_s29, 8  ;;  %p1640_p11 = scmp.lt.s32.totalorder %s1633_s29, %s2342_s1 }
  0x2f   : > { %p1635_p6 = scmp.ne.s32.totalorder %s1633_s29, %s1634_s9  ;;  %p1641_p0 = scmp.lt.s32.totalorder %s1639_s25, %s1634_s9 }
  0x31   : > { %p1637_p9 = pnand %p1636_p8, %p1635_p6  ;;  %p1642_p2 = por %p1641_p0, %p1640_p11 }
  0x33   : > { %p1638_p10 = pneg %p1637_p9 }
  0x35   : > { %p1643_p1 = pnand %p1642_p2, %p1638_p10 }
  0x37   : > { %1646 = shalt.err (!%p1643_p1)
}
  0x38   : > { %1500 = dma.hbm_to_vmem [thread:$0]  (!%p2016_p7), %s359_s27, 128, %s361_s3, %s2029_s30  }
  0x39   : > { %s1865_s24 = smov [#allocation10]   ;;  %s310_s12 = sshll.u32 %s2309_s7, 4  ;;  %s311_s12 = int_to_ptr.hbm [resolvable:$true] %s310_s12 }
  0x3a   : > { %s295_s13 = sshll.u32 %s1865_s24, 4  ;;  %s2343_s9 = smov 8   ;;  %s296_s13 = int_to_ptr.vmem [resolvable:$true] %s295_s13 }
  0x3b   : > { %s2344_s29 = smov 128   ;;  %s1866_s21 = smov [#allocation11]  }
  0x3c   : > { %1490 = dma.hbm_to_vmem [thread:$0]  (!%p1968_p5), %s294_s14, 1024, %s296_s13, [#allocation9], %s2344_s29, %s2344_s29, %s2343_s9  }
  0x3d   : > { %s312_s25 = sshll.u32 %s1866_s21, 4  ;;  %s337_s26 = scalar_lea.hbm %s2302_s0, %s2014_s18  ;;  %s313_s25 = int_to_ptr.vmem [resolvable:$true] %s312_s25 }
  0x3e   : > { %1493 = dma.hbm_to_vmem [thread:$0]  (!%p1968_p5), %s311_s12, 1024, %s313_s25, [#allocation12], %s2344_s29, %s2344_s29, %s2343_s9  }
  0x3f   : > { %s339_s24 = sshll.u32 %s337_s26, 4  ;;  %s333_s23 = scalar_lea.vmem [#allocation2], %s2011_s15  ;;  %s340_s24 = int_to_ptr.hbm [resolvable:$true] %s339_s24 }
  0x40   : > { %s341_s22 = sshll.u32 %s333_s23, 4  ;;  %s2345_s1 = sand.u32 1, %s1856_s11   ;;  %s342_s22 = int_to_ptr.vmem [resolvable:$true] %s341_s22 }
  0x41   : > { %s330_s14 = scalar_lea.sflag [#allocation3], %s2345_s1  ;;  %s1722_s13 = sshra.s32 %s340_s24, 4  ;;  %s1723_s13 = int_to_ptr.hbm [resolvable:$true] %s1722_s13 }
  0x42   : > { %s1724_s21 = scalar_lea.hbm %s1723_s13, 8  ;;  %s1729_s27 = scalar_lea.hbm %s2302_s0, 32 }
  0x43   : > { %p1725_p1 = scmp.ne.s32.totalorder %s1723_s13, %s1724_s21  ;;  %p1730_p5 = scmp.lt.s32.totalorder %s1723_s13, %s2302_s0 }
  0x44   : > { %p1731_p10 = scmp.lt.s32.totalorder %s1729_s27, %s1724_s21 }
  0x45   : > { %p1727_p6 = pnand %p1725_p1, %p1636_p8 }
  0x46   : > { %p1732_p11 = por %p1731_p10, %p1730_p5 }
  0x47   : > { %p1728_p9 = pneg %p1727_p6 }
  0x49   : > { %p1733_p0 = pnand %p1732_p11, %p1728_p9 }
  0x4b   : > { %1736 = shalt.err (!%p1733_p0)
}
  0x4c   : > { %1497 = dma.hbm_to_vmem [thread:$0]  (!%p2016_p7), %s340_s24, 128, %s342_s22, %s330_s14  }
  0x4d   : > { %s375_s25 = scalar_lea.hbm %s2304_s2, %s2014_s18  ;;  %s371_s23 = scalar_lea.vmem [#allocation7], %s2011_s15 }
  0x4e   : > { %s377_s26 = sshll.u32 %s375_s25, 4  ;;  %s379_s20 = sshll.u32 %s371_s23, 4  ;;  %s378_s26 = int_to_ptr.hbm [resolvable:$true] %s377_s26  ;;  %s380_s20 = int_to_ptr.vmem [resolvable:$true] %s379_s20 }
  0x4f   : > { %s1752_s13 = sshra.s32 %s378_s26, 4  ;;  %s1759_s24 = scalar_lea.hbm %s2304_s2, 32  ;;  %s1753_s13 = int_to_ptr.hbm [resolvable:$true] %s1752_s13 }
  0x50   : > { %s1754_s21 = scalar_lea.hbm %s1753_s13, 8  ;;  %p1760_p9 = scmp.lt.s32.totalorder %s1753_s13, %s2304_s2 }
  0x51   : > { %p1755_p2 = scmp.ne.s32.totalorder %s1753_s13, %s1754_s21  ;;  %p1761_p5 = scmp.lt.s32.totalorder %s1759_s24, %s1754_s21 }
  0x53   : > { %p1757_p1 = pnand %p1755_p2, %p1636_p8  ;;  %p1762_p10 = por %p1761_p5, %p1760_p9 }
  0x55   : > { %p1758_p6 = pneg %p1757_p1 }
  0x57   : > { %p1763_p11 = pnand %p1762_p10, %p1758_p6 }
  0x59   : > { %1766 = shalt.err (!%p1763_p11)
}
  0x5a   : > { %1503 = dma.hbm_to_vmem [thread:$0]  (!%p2016_p7), %s378_s26, 128, %s380_s20, %s2029_s30  }
  0x5b   : > { %388 = sbr.rel (%p1960_p3) target bundleno = 1466 (0x5ba), region = 56  ;;  %s2096_s15 = sand.u32 (!%p1960_p3), 1, %s1852_s10  }
  0x5c   : > { %s2099_s18 = sshll.u32 (!%p1960_p3), %s2096_s15, 3  ;;  %s391_s12 = scalar_lea.sflag (!%p1960_p3), [#allocation3], %s2096_s15 }
  0x5d   : > { %s394_s9 = scalar_lea.vmem (!%p1960_p3), [#allocation2], %s2099_s18 }
  0x60   : > { %1827 = dma.done.wait (%p1995_p12), %s391_s12, 128  }
  0x61   : > { %1829 = vsyncadd (%p1995_p12), %s391_s12, 4294967168  ;;  %s400_s30 = sand.u32 1, %s1955_s16   ;;  %s404_s19 = scalar_lea.vmem [#allocation5], %s2099_s18 }
  0x62   : > { %s401_s17 = scalar_lea.sflag [#allocation6], %s400_s30 }
  0x63   : > { %1831 = dma.done.wait (%p1995_p12), %s401_s17, 256  }
  0x64   : > { %1833 = vsyncadd (%p1995_p12), %s401_s17, 4294967040  ;;  %s414_s1 = scalar_lea.vmem [#allocation7], %s2099_s18  ;;  %p2346_p3 = scmp.eq.s32.totalorder %s1955_s16, 0 }
  0x66   : > { %1835 = dma.done.wait (%p2346_p3), [#allocation9], 2048   ;;  %p2347_p7 = pmov %p2346_p3 }
  0x67   : > { %p2348_p8 = pmov %p2346_p3 }
  0x68   : > { %1837 = vsyncadd (%p2347_p7), [#allocation9], 4294965248 }
  0x69   : > { %1839 = dma.done.wait (%p2348_p8), [#allocation12], 1024   ;;  %p2349_p0 = pmov %p2346_p3 }
  0x6a   : > { %v521_v0 = vld [vmem:[#allocation10 + $0x38] sm:$0xff]  ;;  %v520_v1 = vld [vmem:[#allocation10 + $0x30] sm:$0xff]  ;;  %v519_v4 = vld [vmem:[#allocation10 + $0x28] sm:$0xff]  ;;  %vm490_vm0 = vcmask 523264   ;;  %vm584_vm1 = vcmask 64512   ;;  %s1867_s23 = smov 112  }
  0x6b   : > { %1841 = vsyncadd (%p2349_p0), [#allocation12], 4294966272  ;;  %v485_v2 = vld [vmem:[#allocation8 + $0x38] sm:$0xff]  ;;  %537 = vmatpush.msra.mxu1 %v521_v0  ;;  %v484_v3 = vld [vmem:[#allocation8 + $0x30] sm:$0xff]  ;;  %s1868_s20 = smov 120   ;;  %s1869_s13 = smov 104  }
  0x6c   : > { %502 = vmatpush.msra.mxu0 %v485_v2  ;;  %v483_v5 = vld [vmem:[#allocation8 + $0x28] sm:$0xff]  ;;  %v518_v6 = vld [vmem:[#allocation10 + $0x20] sm:$0xff]  ;;  %v517_v8 = vld [vmem:[#allocation10 + $0x18] sm:$0xff]  ;;  %s1870_s21 = smov 96   ;;  %s1871_s3 = smov 88  }
  0x6d   : > { %538 = vmatpush.msra.mxu1 %v520_v1  ;;  %v482_v7 = vld [vmem:[#allocation8 + $0x20] sm:$0xff]  ;;  %v481_v9 = vld [vmem:[#allocation8 + $0x18] sm:$0xff]  ;;  %v555_v11 = vld [vmem:[#allocation11 + $0x30] sm:$0xff]  ;;  %s1872_s27 = smov 80   ;;  %s1873_s24 = smov 72  }
  0x6e   : > { %503 = vmatpush.msra.mxu0 %v484_v3  ;;  %v556_v10 = vld [vmem:[#allocation11 + $0x38] sm:$0xff]  ;;  %v516_v12 = vld [vmem:[#allocation10 + $0x10] sm:$0xff]  ;;  %v554_v14 = vld [vmem:[#allocation11 + $0x28] sm:$0xff]  ;;  %s1874_s12 = smov 16   ;;  %s1876_s30 = smov 8  }
  0x6f   : > { %539 = vmatpush.msra.mxu1 %v519_v4  ;;  %v480_v13 = vld [vmem:[#allocation8 + $0x10] sm:$0xff]  ;;  %572 = vmatpush.msra.mxu2 %v556_v10  ;;  %v515_v15 = vld [vmem:[#allocation10 + $0x8] sm:$0xff]  ;;  %v553_v17 = vld [vmem:[#allocation11 + $0x20] sm:$0xff]  ;;  %s1877_s17 = smov 24   ;;  %s1880_s28 = smov 56  }
  0x70   : > { %504 = vmatpush.msra.mxu0 %v483_v5  ;;  %v479_v16 = vld [vmem:[#allocation8 + $0x8] sm:$0xff]  ;;  %v514_v18 = vld [vmem:[#allocation10] sm:$0xff]  ;;  %v475_v21 = vld [vmem:[%s394_s9] sm:$0xff]  ;;  %s1875_s9 = smov 32   ;;  %s1461_s29 = sshll.u32 %s1955_s16, 3 }
  0x71   : > { %540 = vmatpush.msra.mxu1 %v518_v6  ;;  %573 = vmatpush.msra.mxu2 %v555_v11  ;;  %v478_v19 = vld [vmem:[#allocation8] sm:$0xff]  ;;  %v552_v22 = vld [vmem:[#allocation11 + $0x18] sm:$0xff]  ;;  %v551_v23 = vld [vmem:[#allocation11 + $0x10] sm:$0xff]  ;;  %s1256_s16 = scalar_lea.sflag [#allocation4], %s2096_s15 }
  0x72   : > { %505 = vmatpush.msra.mxu0 %v482_v7  ;;  %v476_v20 = vld [vmem:[%s404_s19] sm:$0xff]  ;;  %v477_v26 = vld [vmem:[%s414_s1] sm:$0xff]  ;;  %s1878_s19 = smov 48   ;;  %s1879_s1 = smov 40  }
  0x73   : > { %541 = vmatpush.msra.mxu1 %v517_v8  ;;  %574 = vmatpush.msra.mxu2 %v554_v14  ;;  %v550_v24 = vld [vmem:[#allocation11 + $0x8] sm:$0xff]  ;;  %v549_v25 = vld [vmem:[#allocation11] sm:$0xff]  ;;  %v1567_v27 = vld [vmem:[%s2308_s6] ss:$0 sm:$0xff] }
  0x74   : > { %506 = vmatpush.msra.mxu0 %v481_v9  ;;  %v1568_v28 = vld [vmem:[%s2306_s4] ss:$0 sm:$0xff] }
  0x75   : > { %542 = vmatpush.msra.mxu1 %v516_v12  ;;  %575 = vmatpush.msra.mxu2 %v553_v17  ;;  %v1569_v33 = vld [vmem:[%s2310_s8] ss:$0 sm:$0xff] }
  0x76   : > { %507 = vmatpush.msra.mxu0 %v480_v13 }
  0x77   : > { %543 = vmatpush.msra.mxu1 %v515_v15  ;;  %576 = vmatpush.msra.mxu2 %v552_v22 }
  0x78   : > { %508 = vmatpush.msra.mxu0 %v479_v16 }
  0x79   : > { %544 = vmatpush.msra.mxu1 %v514_v18  ;;  %577 = vmatpush.msra.mxu2 %v551_v23 }
  0x7a   : > { %509 = vmatpush.msra.mxu0 %v478_v19  ;;  %1434 = vmatmul.msk.f32.vlgmr.msra.gmra.mxu1 %vm490_vm0, %v476_v20 }
  0x7b   : > { %1433 = vmatmul.msk.f32.vlgmr.msra.gmra.mxu0 %vm490_vm0, %v475_v21  ;;  %578 = vmatpush.msra.mxu2 %v550_v24 }
  0x7d   : > { %579 = vmatpush.msra.mxu2 %v549_v25 }
  0x7e   : > { %1435 = vmatmul.msk.f32.vlgmr.msra.gmra.mxu2 %vm490_vm0, %v477_v26 }
  0xf7   : > { %v546_v29 = vpop.f32.mrf.mxu1 }
  0xf8   : > { %v511_v30 = vpop.f32.mrf.mxu0  ;;  %v547_v31 = vadd.f32 %v1567_v27, %v546_v29 }
  0xf9   : > { %v512_v32 = vadd.f32 %v1568_v28, %v511_v30 }
  0xfa   : > { %741 = vrot.lane.b32.xlu2 %v547_v31, %s1867_s23  ;;  %661 = vrot.lane.b32.xlu1 %v547_v31, %s1868_s20 }
  0xfb   : > { %1436 = vmatpush.xpose.msk.msra.mxu3 %vm584_vm1, %v547_v31 }
  0xfe   : > { %1437 = vmatmul.msk.f32.vlgmr.msra.gmra.mxu3 %vm584_vm1, %v512_v32 }
 0x101   : > { %v581_v34 = vpop.f32.mrf.mxu2 }
 0x102   : > { %820 = vrot.lane.b32.xlu2 %v547_v31, %s1869_s13  ;;  %659 = vrot.lane.b32.xlu1 %v512_v32, %s1868_s20  ;;  %v2152_v35 = vadd.f32 %v1569_v33, %v581_v34 }
 0x104   : > { %654 = vmatpush.msrb.mxu3 %v2152_v35 }
 0x10a   : > { %899 = vrot.lane.b32.xlu2 %v547_v31, %s1870_s21  ;;  %818 = vrot.lane.b32.xlu1 %v512_v32, %s1869_s13 }
 0x112   : > { %897 = vrot.lane.b32.xlu2 %v512_v32, %s1870_s21  ;;  %978 = vrot.lane.b32.xlu1 %v547_v31, %s1871_s3 }
 0x11a   : > { %1057 = vrot.lane.b32.xlu2 %v547_v31, %s1872_s27  ;;  %976 = vrot.lane.b32.xlu1 %v512_v32, %s1871_s3 }
 0x122   : > { %1134 = vrot.lane.b32.xlu2 %v512_v32, %s1873_s24  ;;  %1055 = vrot.lane.b32.xlu1 %v512_v32, %s1872_s27 }
 0x12a   : > { %713 = vrot.lane.b32.xlu2 %v2152_v35, %s1868_s20 }
 0x154   : > { %v742_v36 = vpop.permute.xlu2 %741 }
 0x155   : > { %1442 = vmatpush.xpose.msk.msrb.mxu1 %vm584_vm1, %v742_v36 }
 0x15c   : > { %v821_v37 = vpop.permute.xlu2 %820 }
 0x164   : > { %v900_v38 = vpop.permute.xlu2 %899 }
 0x165   : > { %1448 = vmatpush.xpose.msk.msra.mxu1 %vm584_vm1, %v900_v38 }
 0x16c   : > { %v662_v39 = vpop.permute.xlu1 %661  ;;  %v898_v53 = vpop.permute.xlu2 %897 }
 0x16d   : > { %1439 = vmatpush.xpose.msk.msra.mxu3 %vm584_vm1, %v662_v39 }
 0x174   : > { %v660_v48 = vpop.permute.xlu1 %659  ;;  %v1058_v1 = vpop.permute.xlu2 %1057 }
 0x17c   : > { %v819_v50 = vpop.permute.xlu1 %818  ;;  %v1135_v5 = vpop.permute.xlu2 %1134 }
 0x181   : > { %v608_v40 = vpop.f32.mrf.mxu3 }
 0x182   : > { %v611_v41 = vmul.f32 0.35355338, %v608_v40 }
 0x184   : > { %v612_v42 = vsel %vm584_vm1, %v611_v41, -inf  ;;  %v979_v59 = vpop.permute.xlu1 %978  ;;  %v714_v12 = vpop.permute.xlu2 %713 }
 0x185   : > { %613 = vmax.xlane.f32.xlu0 %v612_v42  ;;  %734 = vmatpush.msrb.mxu0 %v714_v12 }
 0x18c   : > { %v977_v2 = vpop.permute.xlu1 %976 }
 0x194   : > { %v1056_v3 = vpop.permute.xlu1 %1055 }
 0x1f8   : > { %v614_v43 = vpop.xlane.xlu0 %613 }
 0x1f9   : > { %v615_v44 = vsub.f32 %v611_v41, %v614_v43 }
 0x1fb   : > { %v616_v45 = vmul.f32 1.442695, %v615_v44 }
 0x1fd   : > { %1570 = vpow2.f32 %v616_v45 }
 0x203   : > { %v1571_v46 = vpop.eup %1570 }
 0x204   : > { %v618_v47 = vsel %vm584_vm1, %v1571_v46, 0.0 }
 0x205   : > { %619 = vadd.xlane.f32.xlu0 %v618_v47 }
 0x219   : > { %739 = vrot.lane.b32.xlu0 %v512_v32, %s1867_s23 }
 0x221   : > { %1136 = vrot.lane.b32.xlu0 %v547_v31, %s1873_s24 }
 0x278   : > { %v620_v49 = vpop.xlane.xlu0 %619 }
 0x279   : > { %1572 = vrcp.f32 %v620_v49  ;;  %v632_v55 = vand.u32 2147483648, %v620_v49  ;;  %v630_v57 = vand.u32 2147483647, %v620_v49  ;;  %vm626_vm3 = vweird.f32 %v620_v49 }
 0x27b   : > { %v633_v60 = vor.u32 1.1754944e-38, %v632_v55  ;;  %vm631_vm5 = vcmp.eq.f32.partialorder %v630_v57, 8.507059e+37 }
 0x27f   : > { %v1573_v51 = vpop.eup %1572 }
 0x280   : > { %v622_v52 = vmul.f32 %v1573_v51, %v620_v49  ;;  %vm627_vm2 = vweird.f32 %v1573_v51 }
 0x281   : > { %vm628_vm4 = vmor %vm626_vm3, %vm627_vm2 }
 0x282   : > { %v623_v54 = vsub.f32 1.0, %v622_v52 }
 0x284   : > { %v624_v56 = vmul.f32 %v1573_v51, %v623_v54 }
 0x286   : > { %v625_v58 = vadd.f32 %v1573_v51, %v624_v56 }
 0x288   : > { %v629_v61 = vsel %vm628_vm4, %v1573_v51, %v625_v58 }
 0x289   : > { %v634_v62 = vsel %vm631_vm5, %v633_v60, %v629_v61 }
 0x28a   : > { %v635_v63 = vmul.f32 %v1571_v46, %v634_v62 }
 0x28b   : > { %v740_v0 = vpop.permute.xlu0 %739 }
 0x28c   : > { %1438 = vmatmul.msk.f32.vlgmr.msrb.gmra.mxu3 %vm584_vm1, %v635_v63  ;;  %1443 = vmatmul.msk.f32.vlgmr.msrb.gmra.mxu1 %vm584_vm1, %v740_v0 }
 0x28d   : > { %1445 = vmatpush.xpose.msk.msrb.mxu3 %vm584_vm1, %v821_v37  ;;  %1454 = vmatpush.xpose.msk.msrb.mxu1 %vm584_vm1, %v1058_v1 }
 0x293   : > { %v1137_v4 = vpop.permute.xlu0 %1136 }
 0x294   : > { %1440 = vmatmul.msk.f32.vlgmr.msra.gmra.mxu3 %vm584_vm1, %v660_v48  ;;  %1449 = vmatmul.msk.f32.vlgmr.msra.gmra.mxu1 %vm584_vm1, %v898_v53 }
 0x295   : > { %1451 = vmatpush.xpose.msk.msra.mxu3 %vm584_vm1, %v979_v59 }
 0x29c   : > { %1446 = vmatmul.msk.f32.vlgmr.msrb.gmra.mxu3 %vm584_vm1, %v819_v50  ;;  %1455 = vmatmul.msk.f32.vlgmr.msrb.gmra.mxu1 %vm584_vm1, %v1056_v3 }
 0x29d   : > { %1457 = vmatpush.xpose.msk.msrb.mxu3 %vm584_vm1, %v1137_v4 }
 0x2a4   : > { %1452 = vmatmul.msk.f32.vlgmr.msra.gmra.mxu3 %vm584_vm1, %v977_v2 }
 0x2ac   : > { %1458 = vmatmul.msk.f32.vlgmr.msrb.gmra.mxu3 %vm584_vm1, %v1135_v5 }
 0x309   : > { %v764_v6 = vpop.f32.mrf.mxu1 }
 0x30a   : > { %v767_v7 = vmul.f32 0.35355338, %v764_v6 }
 0x30c   : > { %v768_v8 = vsel %vm584_vm1, %v767_v7, -inf }
 0x30d   : > { %769 = vmax.xlane.f32.xlu1 %v768_v8 }
 0x30f   : > { %v2180_v16 = vpop.f32.mrf.mxu3 }
 0x311   : > { %v922_v9 = vpop.f32.mrf.mxu1 }
 0x312   : > { %v925_v10 = vmul.f32 0.35355338, %v922_v9 }
 0x314   : > { %v926_v11 = vsel %vm584_vm1, %v925_v10, -inf }
 0x315   : > { %927 = vmax.xlane.f32.xlu0 %v926_v11 }
 0x317   : > { %v684_v20 = vpop.f32.mrf.mxu3 }
 0x318   : > { %v687_v38 = vmul.f32 0.35355338, %v684_v20 }
 0x319   : > { %v1080_v13 = vpop.f32.mrf.mxu1 }
 0x31a   : > { %v1083_v14 = vmul.f32 0.35355338, %v1080_v13  ;;  %v688_v40 = vsel %vm584_vm1, %v687_v38, -inf }
 0x31c   : > { %v1084_v15 = vsel %vm584_vm1, %v1083_v14, -inf }
 0x31d   : > { %1085 = vmax.xlane.f32.xlu1 %v1084_v15 }
 0x31f   : > { %v843_v27 = vpop.f32.mrf.mxu3 }
 0x320   : > { %v846_v32 = vmul.f32 0.35355338, %v843_v27 }
 0x322   : > { %v847_v37 = vsel %vm584_vm1, %v846_v32, -inf }
 0x327   : > { %v1001_v34 = vpop.f32.mrf.mxu3 }
 0x328   : > { %v1004_v39 = vmul.f32 0.35355338, %v1001_v34 }
 0x32a   : > { %v1005_v41 = vsel %vm584_vm1, %v1004_v39, -inf }
 0x32f   : > { %v1159_v42 = vpop.f32.mrf.mxu3 }
 0x330   : > { %v2194_v43 = vmul.f32 0.35355338, %v1159_v42 }
 0x332   : > { %v1163_v45 = vsel %vm584_vm1, %v2194_v43, -inf }
 0x336   : > { %792 = vrot.lane.b32.xlu1 %v2152_v35, %s1867_s23  ;;  %s2350_s23 = sld [smem:[#allocation27_spill]] }
 0x33c   : > { %s1266_s20 = scalar_lea.hbm %s2350_s23, %s1461_s29 }
 0x380   : > { %v770_v17 = vpop.xlane.xlu1 %769 }
 0x381   : > { %v771_v18 = vsub.f32 %v767_v7, %v770_v17 }
 0x383   : > { %v772_v19 = vmul.f32 1.442695, %v771_v18 }
 0x385   : > { %1574 = vpow2.f32 %v772_v19 }
 0x388   : > { %v928_v21 = vpop.xlane.xlu0 %927 }
 0x389   : > { %v929_v22 = vsub.f32 %v925_v10, %v928_v21 }
 0x38b   : > { %v1575_v23 = vpop.eup %1574  ;;  %v930_v24 = vmul.f32 1.442695, %v929_v22 }
 0x38c   : > { %v774_v25 = vsel %vm584_vm1, %v1575_v23, 0.0 }
 0x38d   : > { %1576 = vpow2.f32 %v930_v24  ;;  %775 = vadd.xlane.f32.xlu1 %v774_v25 }
 0x390   : > { %v1086_v26 = vpop.xlane.xlu1 %1085 }
 0x391   : > { %v1087_v28 = vsub.f32 %v1083_v14, %v1086_v26 }
 0x393   : > { %v2183_v29 = vpop.eup %1576  ;;  %v1088_v30 = vmul.f32 1.442695, %v1087_v28 }
 0x394   : > { %v932_v31 = vsel %vm584_vm1, %v2183_v29, 0.0 }
 0x395   : > { %1578 = vpow2.f32 %v1088_v30  ;;  %933 = vadd.xlane.f32.xlu2 %v932_v31 }
 0x39b   : > { %v2187_v33 = vpop.eup %1578 }
 0x39c   : > { %v1090_v36 = vsel %vm584_vm1, %v2187_v33, 0.0 }
 0x39d   : > { %1091 = vadd.xlane.f32.xlu0 %v1090_v36  ;;  %848 = vmax.xlane.f32.xlu2 %v847_v37 }
 0x3a5   : > { %689 = vmax.xlane.f32.xlu0 %v688_v40  ;;  %1006 = vmax.xlane.f32.xlu2 %v1005_v41 }
 0x3a8   : > { %v793_v44 = vpop.permute.xlu1 %792 }
 0x3a9   : > { %813 = vmatpush.msrb.mxu2 %v793_v44 }
 0x3ad   : > { %1164 = vmax.xlane.f32.xlu0 %v1163_v45 }
 0x3bd   : > { %950 = vrot.lane.b32.xlu2 %v2152_v35, %s1870_s21 }
 0x3c1   : > { %871 = vrot.lane.b32.xlu0 %v2152_v35, %s1869_s13  ;;  %s474_s13 = scalar_lea.vmem [#allocation13], %s2099_s18 }
 0x3c2   : > { %s1268_s21 = sshll.u32 %s474_s13, 4  ;;  %s1269_s21 = int_to_ptr.vmem [resolvable:$true] %s1268_s21 }
 0x400   : > { %v776_v46 = vpop.xlane.xlu1 %775 }
 0x401   : > { %1580 = vrcp.f32 %v776_v46  ;;  %v788_v52 = vand.u32 2147483648, %v776_v46  ;;  %v786_v53 = vand.u32 2147483647, %v776_v46  ;;  %vm782_vm7 = vweird.f32 %v776_v46 }
 0x403   : > { %v789_v56 = vor.u32 1.1754944e-38, %v788_v52  ;;  %vm787_vm9 = vcmp.eq.f32.partialorder %v786_v53, 8.507059e+37 }
 0x407   : > { %v1581_v47 = vpop.eup %1580 }
 0x408   : > { %v778_v48 = vmul.f32 %v1581_v47, %v776_v46  ;;  %v934_v49 = vpop.xlane.xlu2 %933  ;;  %vm783_vm6 = vweird.f32 %v1581_v47 }
 0x409   : > { %1582 = vrcp.f32 %v934_v49  ;;  %vm784_vm8 = vmor %vm782_vm7, %vm783_vm6  ;;  %v946_v4 = vand.u32 2147483648, %v934_v49  ;;  %vm940_vm11 = vweird.f32 %v934_v49  ;;  %v944_v5 = vand.u32 2147483647, %v934_v49 }
 0x40a   : > { %v779_v50 = vsub.f32 1.0, %v778_v48 }
 0x40b   : > { %v947_v12 = vor.u32 1.1754944e-38, %v946_v4  ;;  %vm945_vm13 = vcmp.eq.f32.partialorder %v944_v5, 8.507059e+37 }
 0x40c   : > { %v780_v51 = vmul.f32 %v1581_v47, %v779_v50 }
 0x40e   : > { %v781_v54 = vadd.f32 %v1581_v47, %v780_v51 }
 0x40f   : > { %v1583_v55 = vpop.eup %1582 }
 0x410   : > { %v936_v57 = vmul.f32 %v1583_v55, %v934_v49  ;;  %v849_v58 = vpop.xlane.xlu2 %848  ;;  %v2202_v59 = vpop.xlane.xlu0 %1091  ;;  %v785_v60 = vsel %vm784_vm8, %v1581_v47, %v781_v54  ;;  %vm941_vm10 = vweird.f32 %v1583_v55 }
 0x411   : > { %v850_v61 = vsub.f32 %v846_v32, %v849_v58  ;;  %v790_v63 = vsel %vm787_vm9, %v789_v56, %v785_v60  ;;  %vm942_vm12 = vmor %vm940_vm11, %vm941_vm10  ;;  %vm1098_vm15 = vweird.f32 %v2202_v59 }
 0x412   : > { %v937_v62 = vsub.f32 1.0, %v936_v57  ;;  %v791_v1 = vmul.f32 %v1575_v23, %v790_v63 }
 0x413   : > { %v851_v0 = vmul.f32 1.442695, %v850_v61 }
 0x414   : > { %v938_v2 = vmul.f32 %v1583_v55, %v937_v62  ;;  %1444 = vmatmul.msk.f32.vlgmr.msrb.gmra.mxu2 %vm584_vm1, %v791_v1 }
 0x415   : > { %1584 = vpow2.f32 %v851_v0 }
 0x416   : > { %v939_v3 = vadd.f32 %v1583_v55, %v938_v2 }
 0x418   : > { %v1007_v6 = vpop.xlane.xlu2 %1006  ;;  %v690_v7 = vpop.xlane.xlu0 %689  ;;  %v943_v10 = vsel %vm942_vm12, %v1583_v55, %v939_v3 }
 0x419   : > { %v1008_v8 = vsub.f32 %v1004_v39, %v1007_v6  ;;  %v691_v9 = vsub.f32 %v687_v38, %v690_v7  ;;  %v948_v17 = vsel %vm945_vm13, %v947_v12, %v943_v10  ;;  %v1104_v38 = vand.u32 2147483648, %v2202_v59 }
 0x41a   : > { %v949_v20 = vmul.f32 %v2183_v29, %v948_v17 }
 0x41b   : > { %v2205_v11 = vpop.eup %1584  ;;  %v1009_v13 = vmul.f32 1.442695, %v1008_v8  ;;  %v692_v14 = vmul.f32 1.442695, %v691_v9  ;;  %v1105_v44 = vor.u32 1.1754944e-38, %v1104_v38 }
 0x41c   : > { %v853_v15 = vsel %vm584_vm1, %v2205_v11, 0.0 }
 0x41d   : > { %1586 = vpow2.f32 %v1009_v13  ;;  %854 = vadd.xlane.f32.xlu0 %v853_v15 }
 0x41e   : > { %1588 = vpow2.f32 %v692_v14 }
 0x420   : > { %v951_v18 = vpop.permute.xlu2 %950  ;;  %v1165_v19 = vpop.xlane.xlu0 %1164 }
 0x421   : > { %v1166_v21 = vsub.f32 %v2194_v43, %v1165_v19  ;;  %971 = vmatpush.msra.mxu2 %v951_v18 }
 0x422   : > { %1450 = vmatmul.msk.f32.vlgmr.msra.gmra.mxu2 %vm584_vm1, %v949_v20 }
 0x423   : > { %v2212_v22 = vpop.eup %1586  ;;  %v1167_v23 = vmul.f32 1.442695, %v1166_v21 }
 0x424   : > { %v2214_v24 = vpop.eup %1588  ;;  %v1011_v25 = vsel %vm584_vm1, %v2212_v22, 0.0 }
 0x425   : > { %1590 = vpow2.f32 %v1167_v23  ;;  %1012 = vadd.xlane.f32.xlu1 %v1011_v25  ;;  %v694_v26 = vsel %vm584_vm1, %v2214_v24, 0.0 }
 0x426   : > { %695 = vadd.xlane.f32.xlu2 %v694_v26  ;;  %1592 = vrcp.f32 %v2202_v59 }
 0x42b   : > { %v2220_v27 = vpop.eup %1590 }
 0x42c   : > { %v1169_v28 = vsel %vm584_vm1, %v2220_v27, 0.0  ;;  %v1593_v30 = vpop.eup %1592 }
 0x42d   : > { %1170 = vadd.xlane.f32.xlu0 %v1169_v28  ;;  %v1094_v31 = vmul.f32 %v1593_v30, %v2202_v59  ;;  %vm1099_vm14 = vweird.f32 %v1593_v30 }
 0x42e   : > { %vm1100_vm2 = vmor %vm1098_vm15, %vm1099_vm14 }
 0x42f   : > { %v1095_v32 = vsub.f32 1.0, %v1094_v31 }
 0x431   : > { %v1096_v36 = vmul.f32 %v1593_v30, %v1095_v32 }
 0x433   : > { %v872_v29 = vpop.permute.xlu0 %871  ;;  %v1097_v37 = vadd.f32 %v1593_v30, %v1096_v36 }
 0x434   : > { %892 = vmatpush.msra.mxu0 %v872_v29 }
 0x435   : > { %v1101_v43 = vsel %vm1100_vm2, %v1593_v30, %v1097_v37 }
 0x43e   : > { %1108 = vrot.lane.b32.xlu2 %v2152_v35, %s1872_s27  ;;  %1029 = vrot.lane.b32.xlu1 %v2152_v35, %s1871_s3  ;;  %s1270_s27 = sshll.u32 %s1266_s20, 4  ;;  %s1271_s27 = int_to_ptr.hbm [resolvable:$true] %s1270_s27 }
 0x441   : > { %1187 = vrot.lane.b32.xlu0 %v2152_v35, %s1873_s24  ;;  %v1102_v35 = vand.u32 2147483647, %v2202_v59  ;;  %s1796_s24 = sshra.s32 %s1271_s27, 4  ;;  %s1797_s24 = int_to_ptr.hbm [resolvable:$true] %s1796_s24 }
 0x442   : > { %s1798_s22 = scalar_lea.hbm %s1797_s24, 8  ;;  %p1803_p6 = scmp.lt.s32.totalorder %s1797_s24, %s2350_s23 }
 0x443   : > { %vm1103_vm3 = vcmp.eq.f32.partialorder %v1102_v35, 8.507059e+37  ;;  %p1799_p12 = scmp.ne.s32.totalorder %s1797_s24, %s1798_s22 }
 0x444   : > { %v1106_v46 = vsel %vm1103_vm3, %v1105_v44, %v1101_v43 }
 0x445   : > { %v1107_v52 = vmul.f32 %v2187_v33, %v1106_v46  ;;  %p1800_p2 = pnand %p1799_p12, %p1999_p13 }
 0x447   : > { %p1801_p1 = pneg %p1800_p2 }
 0x490   : > { %v2232_v34 = vpop.xlane.xlu0 %854 }
 0x491   : > { %1594 = vrcp.f32 %v2232_v34  ;;  %v867_v2 = vand.u32 2147483648, %v2232_v34  ;;  %vm861_vm9 = vweird.f32 %v2232_v34  ;;  %v865_v4 = vand.u32 2147483647, %v2232_v34 }
 0x493   : > { %v868_v9 = vor.u32 1.1754944e-38, %v867_v2  ;;  %vm866_vm11 = vcmp.eq.f32.partialorder %v865_v4, 8.507059e+37 }
 0x497   : > { %v815_v39 = vpop.f32.mrf.mxu2  ;;  %v1595_v42 = vpop.eup %1594 }
 0x498   : > { %v2238_v40 = vpop.xlane.xlu1 %1012  ;;  %1218 = vrot.lane.b32.xlu2 %v815_v39, %s1874_s12  ;;  %v857_v45 = vmul.f32 %v1595_v42, %v2232_v34  ;;  %vm862_vm6 = vweird.f32 %v1595_v42  ;;  %s1802_s12 = scalar_lea.hbm %s2350_s23, 32 }
 0x499   : > { %v696_v41 = vpop.xlane.xlu2 %695  ;;  %vm863_vm10 = vmor %vm861_vm9, %vm862_vm6  ;;  %v1025_v15 = vand.u32 2147483648, %v2238_v40  ;;  %vm1019_vm13 = vweird.f32 %v2238_v40  ;;  %v1023_v17 = vand.u32 2147483647, %v2238_v40  ;;  %vm1242_vm6 = vcmask 130048   ;;  %p1804_p9 = scmp.lt.s32.totalorder %s1802_s12, %s1798_s22 }
 0x49a   : > { %1596 = vrcp.f32 %v696_v41  ;;  %v858_v48 = vsub.f32 1.0, %v857_v45  ;;  %v706_v55 = vand.u32 2147483647, %v696_v41  ;;  %v708_v56 = vand.u32 2147483648, %v696_v41 }
 0x49b   : > { %1598 = vrcp.f32 %v2238_v40  ;;  %vm702_vm5 = vweird.f32 %v696_v41  ;;  %v1026_v23 = vor.u32 1.1754944e-38, %v1025_v15  ;;  %vm1024_vm15 = vcmp.eq.f32.partialorder %v1023_v17, 8.507059e+37  ;;  %p1805_p5 = por %p1804_p9, %p1803_p6 }
 0x49c   : > { %v859_v57 = vmul.f32 %v1595_v42, %v858_v48  ;;  %v709_v33 = vor.u32 1.1754944e-38, %v708_v56  ;;  %vm707_vm8 = vcmp.eq.f32.partialorder %v706_v55, 8.507059e+37  ;;  %vm1248_vm9 = vcmask 326656  }
 0x49d   : > { %p1806_p10 = pnand %p1805_p5, %p1801_p1 }
 0x49e   : > { %v860_v62 = vadd.f32 %v1595_v42, %v859_v57 }
 0x4a0   : > { %v1597_v47 = vpop.eup %1596  ;;  %v2242_v51 = vpop.xlane.xlu0 %1170  ;;  %v864_v6 = vsel %vm863_vm10, %v1595_v42, %v860_v62  ;;  %vm1250_vm10 = vcmask 392192  }
 0x4a1   : > { %v698_v49 = vmul.f32 %v1597_v47, %v696_v41  ;;  %v1109_v50 = vpop.permute.xlu2 %1108  ;;  %v1599_v53 = vpop.eup %1598  ;;  %1600 = vrcp.f32 %v2242_v51  ;;  %vm703_vm4 = vweird.f32 %v1597_v47  ;;  %v869_v10 = vsel %vm866_vm11, %v868_v9, %v864_v6 }
 0x4a2   : > { %1129 = vmatpush.msrb.mxu2 %v1109_v50  ;;  %v1015_v58 = vmul.f32 %v1599_v53, %v2238_v40  ;;  %vm704_vm7 = vmor %vm702_vm5, %vm703_vm4  ;;  %vm1020_vm12 = vweird.f32 %v1599_v53  ;;  %v870_v19 = vmul.f32 %v2205_v11, %v869_v10  ;;  %v1183_v26 = vand.u32 2147483648, %v2242_v51 }
 0x4a3   : > { %v699_v54 = vsub.f32 1.0, %v698_v49  ;;  %1456 = vmatmul.msk.f32.vlgmr.msrb.gmra.mxu2 %vm584_vm1, %v1107_v52  ;;  %vm1021_vm14 = vmor %vm1019_vm13, %vm1020_vm12  ;;  %vm1177_vm3 = vweird.f32 %v2242_v51  ;;  %v1181_v28 = vand.u32 2147483647, %v2242_v51 }
 0x4a4   : > { %v1016_v63 = vsub.f32 1.0, %v1015_v58  ;;  %v1184_v30 = vor.u32 1.1754944e-38, %v1183_v26 }
 0x4a5   : > { %v700_v59 = vmul.f32 %v1597_v47, %v699_v54  ;;  %v973_v60 = vpop.f32.mrf.mxu2  ;;  %vm1182_vm5 = vcmp.eq.f32.partialorder %v1181_v28, 8.507059e+37 }
 0x4a6   : > { %1226 = vrot.lane.b32.xlu1 %v973_v60, %s1875_s9  ;;  %v1017_v7 = vmul.f32 %v1599_v53, %v1016_v63 }
 0x4a7   : > { %v701_v61 = vadd.f32 %v1597_v47, %v700_v59  ;;  %v1601_v1 = vpop.eup %1600 }
 0x4a8   : > { %v1173_v8 = vmul.f32 %v1601_v1, %v2242_v51  ;;  %v1018_v13 = vadd.f32 %v1599_v53, %v1017_v7  ;;  %vm1178_vm2 = vweird.f32 %v1601_v1 }
 0x4a9   : > { %v705_v0 = vsel %vm704_vm7, %v1597_v47, %v701_v61  ;;  %vm1179_vm4 = vmor %vm1177_vm3, %vm1178_vm2  ;;  %vm1244_vm7 = vcmask 195584  }
 0x4aa   : > { %v710_v3 = vsel %vm707_vm8, %v709_v33, %v705_v0  ;;  %v1174_v14 = vsub.f32 1.0, %v1173_v8  ;;  %v1022_v20 = vsel %vm1021_vm14, %v1599_v53, %v1018_v13  ;;  %vm1246_vm8 = vcmask 261120  }
 0x4ab   : > { %v711_v5 = vmul.f32 %v2214_v24, %v710_v3  ;;  %v1027_v24 = vsel %vm1024_vm15, %v1026_v23, %v1022_v20 }
 0x4ac   : > { %v1175_v21 = vmul.f32 %v1601_v1, %v1174_v14  ;;  %v1028_v29 = vmul.f32 %v2212_v22, %v1027_v24 }
 0x4ad   : > { %1441 = vmatmul.msk.f32.vlgmr.msrb.gmra.mxu0 %vm584_vm1, %v711_v5 }
 0x4ae   : > { %v1176_v25 = vadd.f32 %v1601_v1, %v1175_v21 }
 0x4b0   : > { %v1030_v12 = vpop.permute.xlu1 %1029  ;;  %v1180_v11 = vsel %vm1179_vm4, %v1601_v1, %v1176_v25 }
 0x4b1   : > { %1050 = vmatpush.msrb.mxu0 %v1030_v12  ;;  %v1185_v31 = vsel %vm1182_vm5, %v1184_v30, %v1180_v11 }
 0x4b2   : > { %v1186_v32 = vmul.f32 %v2220_v27, %v1185_v31 }
 0x4b3   : > { %v1188_v18 = vpop.permute.xlu0 %1187 }
 0x4b5   : > { %1447 = vmatmul.msk.f32.vlgmr.msra.gmra.mxu0 %vm584_vm1, %v870_v19 }
 0x4b6   : > { %1208 = vmatpush.msra.mxu0 %v1188_v18 }
 0x4bd   : > { %1453 = vmatmul.msk.f32.vlgmr.msrb.gmra.mxu0 %vm584_vm1, %v1028_v29 }
 0x4c5   : > { %1459 = vmatmul.msk.f32.vlgmr.msra.gmra.mxu0 %vm584_vm1, %v1186_v32 }
 0x4f2   : > { %v1219_v41 = vpop.permute.xlu2 %1218 }
 0x518   : > { %v1227_v39 = vpop.permute.xlu1 %1226 }
 0x526   : > { %v1131_v37 = vpop.f32.mrf.mxu2 }
 0x52a   : > { %v736_v34 = vpop.f32.mrf.mxu0 }
 0x52b   : > { %1214 = vrot.lane.b32.xlu1 %v736_v34, %s1876_s30 }
 0x532   : > { %v894_v36 = vpop.f32.mrf.mxu0 }
 0x533   : > { %1222 = vrot.lane.b32.xlu0 %v894_v36, %s1877_s17 }
 0x53a   : > { %v1052_v22 = vpop.f32.mrf.mxu0 }
 0x53b   : > { %1234 = vrot.lane.b32.xlu0 %v1131_v37, %s1878_s19  ;;  %1230 = vrot.lane.b32.xlu2 %v1052_v22, %s1879_s1 }
 0x542   : > { %v1210_v38 = vpop.f32.mrf.mxu0 }
 0x543   : > { %1238 = vrot.lane.b32.xlu1 %v1210_v38, %s1880_s28 }
 0x59d   : > { %v1215_v27 = vpop.permute.xlu1 %1214 }
 0x59e   : > { %v1241_v40 = vsel %vm584_vm1, %v2180_v16, %v1215_v27  ;;  %v1231_v16 = vpop.permute.xlu2 %1230  ;;  %vm1252_vm1 = vcmask 457728  }
 0x59f   : > { %v1243_v42 = vsel %vm1242_vm6, %v1241_v40, %v1219_v41 }
 0x5a5   : > { %v1223_v35 = vpop.permute.xlu0 %1222 }
 0x5a6   : > { %v1245_v43 = vsel %vm1244_vm7, %v1243_v42, %v1223_v35 }
 0x5a7   : > { %v1247_v44 = vsel %vm1246_vm8, %v1245_v43, %v1227_v39 }
 0x5a8   : > { %v1249_v46 = vsel %vm1248_vm9, %v1247_v44, %v1231_v16 }
 0x5ad   : > { %v1235_v45 = vpop.permute.xlu0 %1234 }
 0x5ae   : > { %v1251_v47 = vsel %vm1250_vm10, %v1249_v46, %v1235_v45 }
 0x5b5   : > { %v1239_v48 = vpop.permute.xlu1 %1238 }
 0x5b6   : > { %v1253_v49 = vsel %vm1252_vm1, %v1251_v47, %v1239_v48 }
 0x5b7   : > { %1254 = vst.msk [vmem:[%s474_s13] sm:$0xff] %vm490_vm0, %v1253_v49 }
 0x5b8   : > { %1809 = shalt.err (!%p1806_p10)
}
 0x5b9   : > { %1482 = dma.vmem_to_hbm [thread:$0]  (%p1999_p13), %s1269_s21, 128, %s1271_s27, %s1256_s16  }
 0x5ba PF: > { %s2352_s15 = sld [smem:[#allocation20_spill]] }
 0x5bb   : > { %s2353_s17 = sld [smem:[#allocation19_spill]] }
 0x5c0   : > { %p1515_p11 = scmp.ge.s32.totalorder %s2352_s15, 2 }
 0x5c1   : > { %s1282_s1 = sand.u32 1, %s2353_s17  }
 0x5c2   : > { %p1505_p3 = pnand %p1515_p11, %p2005_p4  ;;  %s1283_s28 = scalar_lea.sflag [#allocation4], %s1282_s1 }
 0x5c4   : > { %p1506_p7 = pneg %p1505_p3 }
 0x5c6   : > { %1843 = dma.done.wait (%p1506_p7), %s1283_s28, 128  }
 0x5c7   : > { %1845 = vsyncadd (%p1506_p7), %s1283_s28, 4294967168  ;;  %s2355_s12 = sld [smem:[#allocation21_spill]]  ;;  %s2357_s30 = smov %s1852_s10 }
 0x5c8   : > { %s2356_s29 = sld [smem:[#allocation22_spill]]  ;;  %s2358_s10 = smov %s1856_s11 }
 0x5cd   : > { %p27_p8 = scmp.ge.s32.totalorder %s2355_s12, 6  }
 0x5ce   : > { %s2359_s11 = smov %s2356_s29 }
 0x5cf   :  { %29 = sbr.rel (!%p27_p8) target bundleno = 13 (0xd), region = 137 }
 0x5d4   :  { %1289 = vsyncpa [#allocation3], 1 }
 0x5d5   :  { %1291 = vsyncpa [#allocation3 + $0x1], 1 }
 0x5d6   :  { %1292 = vsyncpa [#allocation6], 1 }
 0x5d7   :  { %1294 = vsyncpa [#allocation6 + $0x1], 1 }
 0x5d8   :  { %1295 = vsyncpa [#allocation9], 1 }
 0x5d9   :  { %1296 = vsyncpa [#allocation12], 1 }
 0x5da   :  { %1297 = vsyncpa [#allocation4], 1 }
 0x5db   :  { %1299 = vsyncpa [#allocation4 + $0x1], 1 }

</bundles_post_ra>
